<compile_context>
chip_gen: v5e
topology: v5e:2x2
jax: 0.10.0
libtpu: 0.0.40
codegen_flags: <defaults>
</compile_context>

<pallas_src>
import functools
import math

import jax
import jax.numpy as jnp
from jax import lax
from jax.experimental import pallas as pl
from jax.experimental.pallas import tpu as pltpu

BN_EPS = 1e-5
# Production knob: set to jnp.bfloat16 for 2-4x MXU throughput on v5e/v6e/v7x
# (accumulation stays f32 via preferred_element_type). f32 here so the demo
# matches the f32 reference at tight tolerance.
MATMUL_DTYPE = jnp.float32


def _round_up(n, m):
    return ((n + m - 1) // m) * m


def _vmem_limit_bytes():
    # v5e/v6e: 128 MiB VMEM per core, v7x: 64 MiB. Budget ~75% of physical.
    try:
        cap = pltpu.get_tpu_info().vmem_capacity_bytes
    except Exception:
        cap = 64 * 1024 * 1024
    return min(int(cap * 3 // 4), 100 * 1024 * 1024)


def _sigmoid(z):
    return 1.0 / (1.0 + jnp.exp(-z))


# ----------------------------------------------------------------------------
# Kernel 1: Conv1d (k=5, pad=2) as 5 shifted matmuls, with the *previous*
# layer's BN-apply + ReLU fused in, plus per-sample BN partial statistics.
# Grid over batch ('parallel'); stats are partial outputs reduced host-side.
# ----------------------------------------------------------------------------
def _conv_stats_kernel(x_ref, scale_ref, shift_ref, w_ref, b_ref,
                       y_ref, sum_ref, sq_ref, *, fuse_act, pad):
    x = x_ref[...]                                    # (T + 2*pad, Cp)
    T, Cp = y_ref.shape
    if fuse_act:
        # Fused BN-apply + ReLU of the previous layer; then re-zero the halo
        # rows so the conv's zero padding is exact (PyTorch pads the activated
        # input with literal zeros).
        x = jnp.maximum(x * scale_ref[...] + shift_ref[...], 0.0)
        row = lax.broadcasted_iota(jnp.int32, x.shape, 0)
        x = jnp.where((row >= pad) & (row < pad + T), x, 0.0)
    x = x.astype(MATMUL_DTYPE)

    K = w_ref.shape[0]
    acc = jnp.zeros((T, Cp), jnp.float32)
    for k in range(K):                                # static unroll: K MXU matmuls
        acc = acc + jnp.dot(x[k:k + T, :], w_ref[k],
                            preferred_element_type=jnp.float32)
    y = acc + b_ref[...]                              # (T, Cp) + (1, Cp)
    y_ref[...] = y.astype(y_ref.dtype)

    # Per-sample partial statistics (reduced over B in the wrapper); partial
    # outputs (instead of a resident accumulator) keep the batch axis parallel.
    sum_ref[...] = jnp.sum(y, axis=0, keepdims=True)
    sq_ref[...] = jnp.sum(y * y, axis=0, keepdims=True)


def _conv_layer(h, w, bias, scale_prev, shift_prev, fuse_act, Cp):
    """h: (B, T, Cp) raw (pre-activation) output of the previous layer (or the
    channel-padded encoder input).  Returns raw conv output + BN sums."""
    B, T, _ = h.shape
    Cout, Cin, K = w.shape
    pad = (K - 1) // 2

    h_pad = jnp.pad(h, ((0, 0), (pad, pad), (0, 0)))          # halo along T

    # Pack taps once: w_taps[k, i, o] = w[o, i, k]; zero-pad channels.
    w_taps = jnp.zeros((K, Cp, Cp), jnp.float32)
    w_taps = w_taps.at[:, :Cin, :Cout].set(jnp.transpose(w, (2, 1, 0)))
    w_taps = w_taps.astype(MATMUL_DTYPE)
    b_row = jnp.zeros((1, Cp), jnp.float32).at[0, :Cout].set(bias)

    kernel = functools.partial(_conv_stats_kernel, fuse_act=fuse_act, pad=pad)
    y, psum, psq = pl.pallas_call(
        kernel,
        out_shape=(jax.ShapeDtypeStruct((B, T, Cp), jnp.float32),
                   jax.ShapeDtypeStruct((B, 1, Cp), jnp.float32),
                   jax.ShapeDtypeStruct((B, 1, Cp), jnp.float32)),
        grid=(B,),
        in_specs=[
            pl.BlockSpec((None, T + 2 * pad, Cp), lambda b: (b, 0, 0)),
            pl.BlockSpec((1, Cp), lambda b: (0, 0)),
            pl.BlockSpec((1, Cp), lambda b: (0, 0)),
            pl.BlockSpec((K, Cp, Cp), lambda b: (0, 0, 0)),
            pl.BlockSpec((1, Cp), lambda b: (0, 0)),
        ],
        out_specs=(
            pl.BlockSpec((None, T, Cp), lambda b: (b, 0, 0)),
            pl.BlockSpec((None, 1, Cp), lambda b: (b, 0, 0)),
            pl.BlockSpec((None, 1, Cp), lambda b: (b, 0, 0)),
        ),
        compiler_params=pltpu.CompilerParams(
            dimension_semantics=("parallel",),
            vmem_limit_bytes=_vmem_limit_bytes()),
    )(h_pad, scale_prev, shift_prev, w_taps, b_row)

    bn_sum = jnp.sum(psum, axis=0)                            # (1, Cp)
    bn_sq = jnp.sum(psq, axis=0)                              # (1, Cp)
    return y, bn_sum, bn_sq


def _bn_fold(bn_sum, bn_sq, gamma, beta, n, Cp):
    """Fold batch statistics + affine params into a (scale, shift) pair."""
    Cout = gamma.shape[0]
    gamma_p = jnp.zeros((1, Cp), jnp.float32).at[0, :Cout].set(gamma)
    beta_p = jnp.zeros((1, Cp), jnp.float32).at[0, :Cout].set(beta)
    mean = bn_sum / n
    # TODO(synk): one-pass E[y^2]-E[y]^2 in f32 can lose precision for very
    # large-magnitude activations; fine at typical post-BN scales.
    var = jnp.maximum(bn_sq / n - mean * mean, 0.0)
    inv_std = lax.rsqrt(var + BN_EPS)
    scale = gamma_p * inv_std
    shift = beta_p - mean * scale
    return scale, shift


# ----------------------------------------------------------------------------
# Kernel 2: hoisted LSTM input projection (one big matmul per direction),
# fused with conv3's BN-apply + ReLU.  Biases (b_ih + b_hh) folded in.
# ----------------------------------------------------------------------------
def _gates_kernel(x_ref, scale_ref, shift_ref, w_ref, b_ref, g_ref):
    x = jnp.maximum(x_ref[...] * scale_ref[...] + shift_ref[...], 0.0)
    x = x.astype(MATMUL_DTYPE)                                 # (TT, B, Cp)
    g = jnp.einsum("tbc,cg->tbg", x, w_ref[...],
                   preferred_element_type=jnp.float32)         # (TT, B, 4H)
    g_ref[...] = (g + b_ref[...]).astype(g_ref.dtype)


# ----------------------------------------------------------------------------
# Kernel 3: recurrent bidirectional LSTM.  Grid = (direction, time-block);
# direction is 'parallel' (2 TCs on v7x), time is 'arbitrary' with h/c carried
# in VMEM scratch.  Length masking via a tiny resident (B, 1) int32 block.
# ----------------------------------------------------------------------------
def _bilstm_kernel(g_ref, whh_ref, lens_ref, out_ref, h_sc, c_sc):
    d = pl.program_id(0)            # 0 = forward, 1 = backward
    tb = pl.program_id(1)
    nT = pl.num_programs(1)

    @pl.when(tb == 0)
    def _():
        h_sc[...] = jnp.zeros_like(h_sc)
        c_sc[...] = jnp.zeros_like(c_sc)

    TT = g_ref.shape[0]
    H = h_sc.shape[-1]
    T_total = nT * TT
    lens = lens_ref[...]                                       # (B, 1) int32

    def step(j, carry):
        s = tb * TT + j                                        # processing step
        row = jnp.where(d == 0, j, TT - 1 - j)                 # row within block
        t_glob = jnp.where(d == 0, s, T_total - 1 - s)         # original time
        gates = g_ref[row] + jnp.dot(h_sc[...], whh_ref[...],
                                     preferred_element_type=jnp.float32)
        i_g = _sigmoid(gates[:, 0:H])
        f_g = _sigmoid(gates[:, H:2 * H])
        g_g = jnp.tanh(gates[:, 2 * H:3 * H])
        o_g = _sigmoid(gates[:, 3 * H:4 * H])
        c_new = f_g * c_sc[...] + i_g * g_g
        h_new = o_g * jnp.tanh(c_new)
        keep = t_glob < lens                                   # (B, 1) bool
        c_sc[...] = jnp.where(keep, c_new, c_sc[...])
        h_sc[...] = jnp.where(keep, h_new, h_sc[...])
        out_ref[row] = jnp.where(keep, h_new, 0.0).astype(out_ref.dtype)
        return carry

    lax.fori_loop(0, TT, step, 0, unroll=True)


def bilstm_forward(y3, scale3, shift3, input_lengths, p, Cp, time_tile):
    """y3: (B, T, Cp) raw conv3 output (BN+ReLU applied inside gates kernel)."""
    B, T, _ = y3.shape
    C = p["w_ih_f"].shape[1]
    H = p["w_hh_f"].shape[1]

    TT = time_tile
    T_pad = _round_up(T, TT)
    xT = jnp.transpose(y3, (1, 0, 2))                          # (T, B, Cp)
    if T_pad != T:
        xT = jnp.pad(xT, ((0, T_pad - T), (0, 0), (0, 0)))
    nT = T_pad // TT

    def pack_wih(w):                                           # (4H, C) -> (Cp, 4H)
        return jnp.zeros((Cp, 4 * H), jnp.float32).at[:C, :].set(w.T)

    w_ih = jnp.stack([pack_wih(p["w_ih_f"]),
                      pack_wih(p["w_ih_b"])]).astype(MATMUL_DTYPE)   # (2, Cp, 4H)
    b_all = jnp.stack([(p["b_ih_f"] + p["b_hh_f"]).reshape(1, 4 * H),
                       (p["b_ih_b"] + p["b_hh_b"]).reshape(1, 4 * H)])  # (2,1,4H)
    w_hh = jnp.stack([p["w_hh_f"].T, p["w_hh_b"].T])                 # (2, H, 4H)
    lens = jnp.asarray(input_lengths, jnp.int32).reshape(B, 1)

    vmem = _vmem_limit_bytes()

    # Stage 1: hoisted input projection (both directions, all time steps).
    gates = pl.pallas_call(
        _gates_kernel,
        out_shape=jax.ShapeDtypeStruct((2, T_pad, B, 4 * H), jnp.float32),
        grid=(2, nT),
        in_specs=[
            pl.BlockSpec((TT, B, Cp), lambda d, i: (i, 0, 0)),
            pl.BlockSpec((1, Cp), lambda d, i: (0, 0)),
            pl.BlockSpec((1, Cp), lambda d, i: (0, 0)),
            pl.BlockSpec((None, Cp, 4 * H), lambda d, i: (d, 0, 0)),
            pl.BlockSpec((None, 1, 4 * H), lambda d, i: (d, 0, 0)),
        ],
        out_specs=pl.BlockSpec((None, TT, B, 4 * H), lambda d, i: (d, i, 0, 0)),
        compiler_params=pltpu.CompilerParams(
            dimension_semantics=("parallel", "parallel"),
            vmem_limit_bytes=vmem),
    )(xT, scale3, shift3, w_ih, b_all)

    # Stage 2: recurrence only.  Backward direction reads/writes mirrored time
    # blocks via the index maps; within-block reversal handled in-kernel.
    out = pl.pallas_call(
        _bilstm_kernel,
        out_shape=jax.ShapeDtypeStruct((T_pad, 2, B, H), jnp.float32),
        grid=(2, nT),
        in_specs=[
            pl.BlockSpec((None, TT, B, 4 * H),
                         lambda d, t: (d, (1 - d) * t + d * (nT - 1 - t), 0, 0)),
            pl.BlockSpec((None, H, 4 * H), lambda d, t: (d, 0, 0)),
            pl.BlockSpec((B, 1), lambda d, t: (0, 0)),
        ],
        out_specs=pl.BlockSpec(
            (TT, None, B, H),
            lambda d, t: ((1 - d) * t + d * (nT - 1 - t), d, 0, 0)),
        scratch_shapes=[pltpu.VMEM((B, H), jnp.float32),
                        pltpu.VMEM((B, H), jnp.float32)],
        compiler_params=pltpu.CompilerParams(
            dimension_semantics=("parallel", "arbitrary"),
            vmem_limit_bytes=vmem),
    )(gates, w_hh, lens)

    # (T_pad, 2, B, H) -> (B, T_pad, 2H) with [forward | backward] per step.
    out = jnp.transpose(out, (2, 0, 1, 3)).reshape(B, T_pad, 2 * H)
    return out


# ----------------------------------------------------------------------------
# Full Encoder forward
# ----------------------------------------------------------------------------
def encoder_forward(x, conv_params, lstm_params, input_lengths,
                    out_length=None, time_tile=16):
    """x: (B, C, T).  `out_length` (static int) should be max(input_lengths);
    if None, the full padded length is returned (no host sync)."""
    B, C, T = x.shape
    Cp = _round_up(C, 128)                                     # lane-dense channels

    h = jnp.transpose(x, (0, 2, 1))                            # (B, T, C)
    if Cp != C:
        h = jnp.pad(h, ((0, 0), (0, 0), (0, Cp - C)))

    scale = jnp.ones((1, Cp), jnp.float32)                     # identity pre-act
    shift = jnp.zeros((1, Cp), jnp.float32)
    n = float(B * T)
    for li, (w, b, gamma, beta) in enumerate(conv_params):
        h, bn_sum, bn_sq = _conv_layer(h, w, b, scale, shift,
                                       fuse_act=(li > 0), Cp=Cp)
        scale, shift = _bn_fold(bn_sum, bn_sq, gamma, beta, n, Cp)

    out = bilstm_forward(h, scale, shift, input_lengths, lstm_params, Cp,
                         time_tile)
    if out_length is None:
        out_length = T
    return out[:, :out_length, :]


# ----------------------------------------------------------------------------
# Pure-JAX reference (same math as the PyTorch module: train-mode BN,
# eval-mode dropout, masked bidirectional LSTM with packed-sequence trim).
# ----------------------------------------------------------------------------
def _reference_encoder(x, conv_params, lstm_params, input_lengths):
    h = x                                                      # (B, C, T)
    for (w, b, gamma, beta) in conv_params:
        y = jax.lax.conv_general_dilated(
            h, w, window_strides=(1,), padding=[(2, 2)],
            dimension_numbers=("NCH", "OIH", "NCH"))
        y = y + b[None, :, None]
        mean = jnp.mean(y, axis=(0, 2), keepdims=True)
        var = jnp.mean((y - mean) ** 2, axis=(0, 2), keepdims=True)
        y = (y - mean) / jnp.sqrt(var + BN_EPS)
        y = y * gamma[None, :, None] + beta[None, :, None]
        h = jnp.maximum(y, 0.0)
    x_btc = jnp.transpose(h, (0, 2, 1))                        # (B, T, C)
    B, T, _ = x_btc.shape
    lens = jnp.asarray(input_lengths)

    def run_dir(w_ih, w_hh, b_ih, b_hh, reverse):
        H = w_hh.shape[1]
        hst = jnp.zeros((B, H), jnp.float32)
        cst = jnp.zeros((B, H), jnp.float32)
        out = jnp.zeros((B, T, H), jnp.float32)
        order = range(T - 1, -1, -1) if reverse else range(T)
        for t in order:
            m = (t < lens).astype(jnp.float32)[:, None]
            gates = x_btc[:, t] @ w_ih.T + b_ih + hst @ w_hh.T + b_hh
            i, f, g, o = jnp.split(gates, 4, axis=-1)
            i = _sigmoid(i); f = _sigmoid(f); g = jnp.tanh(g); o = _sigmoid(o)
            c_new = f * cst + i * g
            h_new = o * jnp.tanh(c_new)
            cst = jnp.where(m > 0, c_new, cst)
            hst = jnp.where(m > 0, h_new, hst)
            out = out.at[:, t].set(h_new * m)
        return out

    p = lstm_params
    out_f = run_dir(p["w_ih_f"], p["w_hh_f"], p["b_ih_f"], p["b_hh_f"], False)
    out_b = run_dir(p["w_ih_b"], p["w_hh_b"], p["b_ih_b"], p["b_hh_b"], True)
    out = jnp.concatenate([out_f, out_b], axis=-1)
    t_max = int(jnp.max(lens))
    return out[:, :t_max, :]


if __name__ == "__main__":
    # Small shapes: batch B=2, channels C=32 (hidden H=16 per LSTM dir), T=16.
    B, C, T, K = 2, 32, 16, 5
    H = C // 2

    key = jax.random.PRNGKey(0)
    ks = list(jax.random.split(key, 16))

    x = jax.random.normal(ks[0], (B, C, T), dtype=jnp.float32)
    lengths_list = [16, 11]                                    # sorted descending
    input_lengths = jnp.array(lengths_list, dtype=jnp.int32)

    conv_params = []
    bw = 1.0 / math.sqrt(C * K)
    for i in range(3):
        w = jax.random.uniform(ks[1 + i], (C, C, K), jnp.float32, -bw, bw)
        b = jax.random.uniform(ks[4 + i], (C,), jnp.float32, -bw, bw)
        gamma = jnp.ones((C,), jnp.float32)                    # BatchNorm1d defaults
        beta = jnp.zeros((C,), jnp.float32)
        conv_params.append((w, b, gamma, beta))

    bl = 1.0 / math.sqrt(H)

    def u(k, shape):
        return jax.random.uniform(k, shape, jnp.float32, -bl, bl)

    lstm_params = {
        "w_ih_f": u(ks[7], (4 * H, C)), "w_hh_f": u(ks[8], (4 * H, H)),
        "b_ih_f": u(ks[9], (4 * H,)),   "b_hh_f": u(ks[10], (4 * H,)),
        "w_ih_b": u(ks[11], (4 * H, C)), "w_hh_b": u(ks[12], (4 * H, H)),
        "b_ih_b": u(ks[13], (4 * H,)),   "b_hh_b": u(ks[14], (4 * H,)),
    }

    # out_length is a static Python int from the caller -> no device sync.
    out = encoder_forward(x, conv_params, lstm_params, input_lengths,
                          out_length=max(lengths_list), time_tile=8)
    out = jax.block_until_ready(out)

    ref = _reference_encoder(x, conv_params, lstm_params, input_lengths)
    assert out.shape == ref.shape, (out.shape, ref.shape)
    max_err = float(jnp.max(jnp.abs(out - ref)))
    assert jnp.allclose(out, ref, atol=2e-3, rtol=2e-3), max_err

    print("KERNEL_OK")
</pallas_src>

<mosaic_0001>
module attributes {stable_mosaic.version = 11 : i64} {
  func.func @_conv_stats_kernel(%arg0: i32, %arg1: memref<1x20x128xf32, #tpu.memory_space<vmem>>, %arg2: memref<1x128xf32, #tpu.memory_space<vmem>>, %arg3: memref<1x128xf32, #tpu.memory_space<vmem>>, %arg4: memref<5x128x128xf32, #tpu.memory_space<vmem>>, %arg5: memref<1x128xf32, #tpu.memory_space<vmem>>, %arg6: memref<1x16x128xf32, #tpu.memory_space<vmem>>, %arg7: memref<1x1x128xf32, #tpu.memory_space<vmem>>, %arg8: memref<1x1x128xf32, #tpu.memory_space<vmem>>) attributes {dimension_semantics = [#tpu.dimension_semantics<parallel>], iteration_bounds = array<i64: 2>, scalar_prefetch = 0 : i64, scratch_operands = 0 : i64, tpu.core_type = #tpu.core_type<tc>, window_params = [{transform_indices = @transform_0, window_bounds = array<i64: 1, 20, 128>}, {pipeline_mode = #tpu.pipeline_mode<synchronous>, transform_indices = @transform_1, window_bounds = array<i64: 1, 128>}, {pipeline_mode = #tpu.pipeline_mode<synchronous>, transform_indices = @transform_2, window_bounds = array<i64: 1, 128>}, {pipeline_mode = #tpu.pipeline_mode<synchronous>, transform_indices = @transform_3, window_bounds = array<i64: 5, 128, 128>}, {pipeline_mode = #tpu.pipeline_mode<synchronous>, transform_indices = @transform_4, window_bounds = array<i64: 1, 128>}, {transform_indices = @transform_5, window_bounds = array<i64: 1, 16, 128>}, {transform_indices = @transform_6, window_bounds = array<i64: 1, 1, 128>}, {transform_indices = @transform_7, window_bounds = array<i64: 1, 1, 128>}]} {
    %c0 = arith.constant 0 : index
    %c0_0 = arith.constant 0 : index
    %c0_1 = arith.constant 0 : index
    %0 = vector.load %arg1[%c0, %c0_0, %c0_1] : memref<1x20x128xf32, #tpu.memory_space<vmem>>, vector<1x20x128xf32>
    %1 = vector.shape_cast %0 : vector<1x20x128xf32> to vector<20x128xf32>
    %cst = arith.constant 0.000000e+00 : f32
    %2 = vector.broadcast %cst : f32 to vector<16x128xf32>
    %3 = vector.extract_strided_slice %1 {offsets = [0, 0], sizes = [16, 128], strides = [1, 1]} : vector<20x128xf32> to vector<16x128xf32>
    %c0_2 = arith.constant 0 : index
    %c0_3 = arith.constant 0 : index
    %c0_4 = arith.constant 0 : index
    %4 = vector.load %arg4[%c0_2, %c0_3, %c0_4] : memref<5x128x128xf32, #tpu.memory_space<vmem>>, vector<1x128x128xf32>
    %5 = vector.shape_cast %4 : vector<1x128x128xf32> to vector<128x128xf32>
    %cst_5 = arith.constant dense<0.000000e+00> : vector<16x128xf32>
    %6 = tpu.matmul %3, %5, %cst_5 {dimension_numbers = #tpu.dot_dimension_numbers<[1], [0], [0], [1], [0, 0, 1, 1], [], []>} : vector<16x128xf32>, vector<128x128xf32>, vector<16x128xf32> -> vector<16x128xf32>
    %7 = arith.addf %2, %6 : vector<16x128xf32>
    %8 = vector.extract_strided_slice %1 {offsets = [1, 0], sizes = [16, 128], strides = [1, 1]} : vector<20x128xf32> to vector<16x128xf32>
    %c1 = arith.constant 1 : index
    %c0_6 = arith.constant 0 : index
    %c0_7 = arith.constant 0 : index
    %9 = vector.load %arg4[%c1, %c0_6, %c0_7] : memref<5x128x128xf32, #tpu.memory_space<vmem>>, vector<1x128x128xf32>
    %10 = vector.shape_cast %9 : vector<1x128x128xf32> to vector<128x128xf32>
    %cst_8 = arith.constant dense<0.000000e+00> : vector<16x128xf32>
    %11 = tpu.matmul %8, %10, %cst_8 {dimension_numbers = #tpu.dot_dimension_numbers<[1], [0], [0], [1], [0, 0, 1, 1], [], []>} : vector<16x128xf32>, vector<128x128xf32>, vector<16x128xf32> -> vector<16x128xf32>
    %12 = arith.addf %7, %11 : vector<16x128xf32>
    %13 = vector.extract_strided_slice %1 {offsets = [2, 0], sizes = [16, 128], strides = [1, 1]} : vector<20x128xf32> to vector<16x128xf32>
    %c2 = arith.constant 2 : index
    %c0_9 = arith.constant 0 : index
    %c0_10 = arith.constant 0 : index
    %14 = vector.load %arg4[%c2, %c0_9, %c0_10] : memref<5x128x128xf32, #tpu.memory_space<vmem>>, vector<1x128x128xf32>
    %15 = vector.shape_cast %14 : vector<1x128x128xf32> to vector<128x128xf32>
    %cst_11 = arith.constant dense<0.000000e+00> : vector<16x128xf32>
    %16 = tpu.matmul %13, %15, %cst_11 {dimension_numbers = #tpu.dot_dimension_numbers<[1], [0], [0], [1], [0, 0, 1, 1], [], []>} : vector<16x128xf32>, vector<128x128xf32>, vector<16x128xf32> -> vector<16x128xf32>
    %17 = arith.addf %12, %16 : vector<16x128xf32>
    %18 = vector.extract_strided_slice %1 {offsets = [3, 0], sizes = [16, 128], strides = [1, 1]} : vector<20x128xf32> to vector<16x128xf32>
    %c3 = arith.constant 3 : index
    %c0_12 = arith.constant 0 : index
    %c0_13 = arith.constant 0 : index
    %19 = vector.load %arg4[%c3, %c0_12, %c0_13] : memref<5x128x128xf32, #tpu.memory_space<vmem>>, vector<1x128x128xf32>
    %20 = vector.shape_cast %19 : vector<1x128x128xf32> to vector<128x128xf32>
    %cst_14 = arith.constant dense<0.000000e+00> : vector<16x128xf32>
    %21 = tpu.matmul %18, %20, %cst_14 {dimension_numbers = #tpu.dot_dimension_numbers<[1], [0], [0], [1], [0, 0, 1, 1], [], []>} : vector<16x128xf32>, vector<128x128xf32>, vector<16x128xf32> -> vector<16x128xf32>
    %22 = arith.addf %17, %21 : vector<16x128xf32>
    %23 = vector.extract_strided_slice %1 {offsets = [4, 0], sizes = [16, 128], strides = [1, 1]} : vector<20x128xf32> to vector<16x128xf32>
    %c4 = arith.constant 4 : index
    %c0_15 = arith.constant 0 : index
    %c0_16 = arith.constant 0 : index
    %24 = vector.load %arg4[%c4, %c0_15, %c0_16] : memref<5x128x128xf32, #tpu.memory_space<vmem>>, vector<1x128x128xf32>
    %25 = vector.shape_cast %24 : vector<1x128x128xf32> to vector<128x128xf32>
    %cst_17 = arith.constant dense<0.000000e+00> : vector<16x128xf32>
    %26 = tpu.matmul %23, %25, %cst_17 {dimension_numbers = #tpu.dot_dimension_numbers<[1], [0], [0], [1], [0, 0, 1, 1], [], []>} : vector<16x128xf32>, vector<128x128xf32>, vector<16x128xf32> -> vector<16x128xf32>
    %27 = arith.addf %22, %26 : vector<16x128xf32>
    %c0_18 = arith.constant 0 : index
    %c0_19 = arith.constant 0 : index
    %28 = vector.load %arg5[%c0_18, %c0_19] : memref<1x128xf32, #tpu.memory_space<vmem>>, vector<1x128xf32>
    %29 = vector.broadcast %28 : vector<1x128xf32> to vector<16x128xf32>
    %30 = arith.addf %27, %29 : vector<16x128xf32>
    %c0_20 = arith.constant 0 : index
    %c0_21 = arith.constant 0 : index
    %c0_22 = arith.constant 0 : index
    %31 = vector.load %arg6[%c0_20, %c0_21, %c0_22] : memref<1x16x128xf32, #tpu.memory_space<vmem>>, vector<1x16x128xf32>
    %32 = vector.shape_cast %31 : vector<1x16x128xf32> to vector<16x128xf32>
    %33 = vector.shape_cast %30 : vector<16x128xf32> to vector<1x16x128xf32>
    tpu.vector_store %arg6[%c0_20, %c0_21, %c0_22], %33 {strides = array<i32>} : memref<1x16x128xf32, #tpu.memory_space<vmem>>, vector<1x16x128xf32>,
    %cst_23 = arith.constant dense<0.000000e+00> : vector<128xf32>
    %34 = vector.multi_reduction <add>, %30, %cst_23 [0] : vector<16x128xf32> to vector<128xf32>
    %35 = vector.shape_cast %34 : vector<128xf32> to vector<1x128xf32>
    %c0_24 = arith.constant 0 : index
    %c0_25 = arith.constant 0 : index
    %c0_26 = arith.constant 0 : index
    %36 = vector.load %arg7[%c0_24, %c0_25, %c0_26] : memref<1x1x128xf32, #tpu.memory_space<vmem>>, vector<1x1x128xf32>
    %37 = vector.shape_cast %36 : vector<1x1x128xf32> to vector<1x128xf32>
    %38 = vector.shape_cast %35 : vector<1x128xf32> to vector<1x1x128xf32>
    tpu.vector_store %arg7[%c0_24, %c0_25, %c0_26], %38 {strides = array<i32>} : memref<1x1x128xf32, #tpu.memory_space<vmem>>, vector<1x1x128xf32>,
    %39 = arith.mulf %30, %30 : vector<16x128xf32>
    %cst_27 = arith.constant dense<0.000000e+00> : vector<128xf32>
    %40 = vector.multi_reduction <add>, %39, %cst_27 [0] : vector<16x128xf32> to vector<128xf32>
    %41 = vector.shape_cast %40 : vector<128xf32> to vector<1x128xf32>
    %c0_28 = arith.constant 0 : index
    %c0_29 = arith.constant 0 : index
    %c0_30 = arith.constant 0 : index
    %42 = vector.load %arg8[%c0_28, %c0_29, %c0_30] : memref<1x1x128xf32, #tpu.memory_space<vmem>>, vector<1x1x128xf32>
    %43 = vector.shape_cast %42 : vector<1x1x128xf32> to vector<1x128xf32>
    %44 = vector.shape_cast %41 : vector<1x128xf32> to vector<1x1x128xf32>
    tpu.vector_store %arg8[%c0_28, %c0_29, %c0_30], %44 {strides = array<i32>} : memref<1x1x128xf32, #tpu.memory_space<vmem>>, vector<1x1x128xf32>,
    return
  }
  func.func @transform_0(%arg0: i32) -> (i32, i32, i32) {
    %c0_i32 = arith.constant 0 : i32
    %c0_i32_0 = arith.constant 0 : i32
    %c0_i32_1 = arith.constant 0 : i32
    return %arg0, %c0_i32, %c0_i32_0 : i32, i32, i32
  }
  func.func @transform_1(%arg0: i32) -> (i32, i32) {
    %c0_i32 = arith.constant 0 : i32
    %c0_i32_0 = arith.constant 0 : i32
    %c0_i32_1 = arith.constant 0 : i32
    return %c0_i32, %c0_i32_0 : i32, i32
  }
  func.func @transform_2(%arg0: i32) -> (i32, i32) {
    %c0_i32 = arith.constant 0 : i32
    %c0_i32_0 = arith.constant 0 : i32
    %c0_i32_1 = arith.constant 0 : i32
    return %c0_i32, %c0_i32_0 : i32, i32
  }
  func.func @transform_3(%arg0: i32) -> (i32, i32, i32) {
    %c0_i32 = arith.constant 0 : i32
    %c0_i32_0 = arith.constant 0 : i32
    %c0_i32_1 = arith.constant 0 : i32
    %c0_i32_2 = arith.constant 0 : i32
    return %c0_i32, %c0_i32_0, %c0_i32_1 : i32, i32, i32
  }
  func.func @transform_4(%arg0: i32) -> (i32, i32) {
    %c0_i32 = arith.constant 0 : i32
    %c0_i32_0 = arith.constant 0 : i32
    %c0_i32_1 = arith.constant 0 : i32
    return %c0_i32, %c0_i32_0 : i32, i32
  }
  func.func @transform_5(%arg0: i32) -> (i32, i32, i32) {
    %c0_i32 = arith.constant 0 : i32
    %c0_i32_0 = arith.constant 0 : i32
    %c0_i32_1 = arith.constant 0 : i32
    return %arg0, %c0_i32, %c0_i32_0 : i32, i32, i32
  }
  func.func @transform_6(%arg0: i32) -> (i32, i32, i32) {
    %c0_i32 = arith.constant 0 : i32
    %c0_i32_0 = arith.constant 0 : i32
    %c0_i32_1 = arith.constant 0 : i32
    return %arg0, %c0_i32, %c0_i32_0 : i32, i32, i32
  }
  func.func @transform_7(%arg0: i32) -> (i32, i32, i32) {
    %c0_i32 = arith.constant 0 : i32
    %c0_i32_0 = arith.constant 0 : i32
    %c0_i32_1 = arith.constant 0 : i32
    return %arg0, %c0_i32, %c0_i32_0 : i32, i32, i32
  }
}

</mosaic_0001>

<bundles_post_ra>
// kernel: tpu_custom_call.1
= control target key start
LH: loop header
LB: loop body
LE: loop exit
PB: predicated region body
PF: predicated region fallthrough
CT: control target
= control target key end

     0   :  { %13 = vsyncpa [#allocation3], 0  ;;  %s1243_s0 = inlined_call_operand.vmem [shape: f32[2,20,128], index: 0, kind: input, shape index: {}]   ;;  %s1244_s1 = inlined_call_operand.vmem [shape: f32[1,128], index: 1, kind: input, shape index: {}]   ;;  %s1245_s2 = inlined_call_operand.vmem [shape: f32[1,128], index: 2, kind: input, shape index: {}]   ;;  %s1246_s3 = inlined_call_operand.hbm [shape: f32[5,128,128], index: 3, kind: input, shape index: {}]   ;;  %s1247_s4 = inlined_call_operand.vmem [shape: f32[1,128], index: 4, kind: input, shape index: {}]   ;;  %s1248_s5 = inlined_call_operand.hbm [shape: f32[2,16,128], index: 5, kind: output, shape index: {0}]   ;;  %s1249_s6 = inlined_call_operand.hbm [shape: f32[2,1,128], index: 6, kind: output, shape index: {1}]   ;;  %s1250_s7 = inlined_call_operand.hbm [shape: f32[2,1,128], index: 7, kind: output, shape index: {2}]  }
   0x1   :  { %14 = vsyncpa [#allocation4], 0 }
   0x2   :  { %16 = vsyncpa [#allocation4 + $0x1], 0 }
   0x3   :  { %17 = vsyncpa [#allocation7], 0 }
   0x4   :  { %19 = vsyncpa [#allocation7 + $0x1], 0  ;;  %s1055_s1 = smov 0   ;;  %s1057_s2 = smov 0  }
   0x5   :  { %s1059_s24 = smov 0   ;;  %s1061_s25 = smov 0  }
   0x6 LB: > { %s1076_s26 = sadd.s32 4294967295, %s1008_s25   ;;  %s756_s27 = sadd.s32 4294967294, %s1008_s25   ;;  %s1008_s25 = sphi %s1061_s25, %s1256_s25   ;;  %s1004_s24 = sphi %s1059_s24, %s1255_s24   ;;  %s1000_s2 = sphi %s1057_s2, %s1254_s2   ;;  %s996_s1 = sphi %s1055_s1, %s1253_s1  }
   0x7   : > { %s1080_s28 = sadd.s32 1, %s1008_s25   ;;  %s142_s29 = sadd.s32 1, %s1004_s24 }
   0x8   : > { %s139_s30 = ssub.s32 %s1008_s25, %s1080_s28  ;;  %p152_p0 = scmp.ne.s32.totalorder %s1004_s24, %s1000_s2 }
   0x9   : > { %p140_p1 = scmp.eq.s32.totalorder %s139_s30, 0  ;;  %p153_p2 = scmp.eq.s32.totalorder %s1076_s26, 1 }
   0xa   : > { %p158_p3 = scmp.ne.s32.totalorder %s1000_s2, %s996_s1  ;;  %p159_p4 = scmp.eq.s32.totalorder %s756_s27, 1 }
   0xb   : > { %s1093_s8 = scalar_select %p140_p1, %s1004_s24, %s142_s29  }
   0xc   : > { %p1095_p5 = por %p153_p2, %p152_p0  ;;  %p1099_p6 = por %p159_p4, %p158_p3 }
   0xd   : > { %p757_p7 = scmp.ge.s32.totalorder %s1008_s25, 1  ;;  %p218_p8 = scmp.lt.s32.totalorder %s1008_s25, 3 }
   0xe   : > { %p811_p9 = scmp.eq.s32.totalorder %s1076_s26, 0  ;;  %s235_s13 = sshll.u32 %s1246_s3, 4  ;;  %s236_s13 = int_to_ptr.hbm [resolvable:$true] %s235_s13 }
   0xf   : > { %p219_p10 = pnand %p757_p7, %p218_p8  ;;  %s1010_s14 = smov [#allocation2]  }
  0x10   : > { %s237_s15 = sshll.u32 %s1010_s14, 4  ;;  %s1011_s16 = smov 128   ;;  %s238_s15 = int_to_ptr.vmem [resolvable:$true] %s237_s15 }
  0x11   : > { %p797_p11 = pneg %p219_p10  ;;  %s1012_s17 = smov 8  }
  0x12   : > { %264 = sbr.rel (%p219_p10) target bundleno = 254 (0xfe), region = 40 }
  0x13   : > { %p798_p12 = pnand %p811_p9, %p797_p11 }
  0x15   : > { %800 = dma.hbm_to_vmem [thread:$0]  (!%p798_p12), %s236_s13, 10240, %s238_s15, [#allocation3], %s1011_s16, %s1011_s16, %s1012_s17  }
  0x17   : > { %983 = dma.done.wait (%p811_p9), [#allocation3], 10240  }
  0x18   : > { %985 = vsyncadd (%p811_p9), [#allocation3], 4294957056  ;;  %v345_v0 = vld [vmem:[#allocation2 + $0xf8] sm:$0xff]  ;;  %v344_v2 = vld [vmem:[#allocation2 + $0xf0] sm:$0xff]  ;;  %p305_p13 = scmp.lt.s32.totalorder %s1076_s26, 1  ;;  %vm420_vm0 = vcmask 1045504  }
  0x19   : > { %v328_v1 = vld [vmem:[#allocation2 + $0x78] sm:$0xff]  ;;  %357 = vmatpush.msra.mxu0 %v345_v0  ;;  %v327_v3 = vld [vmem:[#allocation2 + $0x70] sm:$0xff]  ;;  %v343_v4 = vld [vmem:[#allocation2 + $0xe8] sm:$0xff]  ;;  %vm470_vm1 = vcmask 1044480   ;;  %vm349_vm2 = vcmask 1046528   ;;  %vm520_vm3 = vcmask 1043456  }
  0x1a   : > { %380 = vmatpush.msra.mxu1 %v328_v1  ;;  %v326_v5 = vld [vmem:[#allocation2 + $0x68] sm:$0xff]  ;;  %v342_v6 = vld [vmem:[#allocation2 + $0xe0] sm:$0xff]  ;;  %v419_v8 = vld [vmem:[#allocation2 + $0x178] sm:$0xff]  ;;  %s1119_s18 = scalar_select %p305_p13, %s1076_s26, 1 }
  0x1b   : > { %358 = vmatpush.msra.mxu0 %v344_v2  ;;  %v325_v7 = vld [vmem:[#allocation2 + $0x60] sm:$0xff]  ;;  %v418_v9 = vld [vmem:[#allocation2 + $0x170] sm:$0xff]  ;;  %v469_v10 = vld [vmem:[#allocation2 + $0x1f8] sm:$0xff]  ;;  %428 = vmatpush.msra.mxu2 %v419_v8  ;;  %s1151_s23 = sand.u32 1, %s1000_s2   ;;  %s769_s30 = sshll.u32 %s1076_s26, 4 }
  0x1c   : > { %381 = vmatpush.msra.mxu1 %v327_v3  ;;  %v341_v11 = vld [vmem:[#allocation2 + $0xd8] sm:$0xff]  ;;  %478 = vmatpush.msra.mxu3 %v469_v10  ;;  %v468_v13 = vld [vmem:[#allocation2 + $0x1f0] sm:$0xff]  ;;  %v417_v14 = vld [vmem:[#allocation2 + $0x168] sm:$0xff]  ;;  %s786_s19 = smul.u32 24, %s1119_s18  ;;  %s762_s29 = sshll.u32 %s1151_s23, 4 }
  0x1d   : > { %359 = vmatpush.msra.mxu0 %v343_v4  ;;  %v324_v12 = vld [vmem:[#allocation2 + $0x58] sm:$0xff]  ;;  %v340_v15 = vld [vmem:[#allocation2 + $0xd0] sm:$0xff]  ;;  %429 = vmatpush.msra.mxu2 %v418_v9  ;;  %v467_v17 = vld [vmem:[#allocation2 + $0x1e8] sm:$0xff]  ;;  %s599_s13 = scalar_lea.hbm %s1248_s5, %s769_s30  ;;  %s292_s16 = scalar_lea.vmem [#allocation5], %s762_s29 }
  0x1e   : > { %382 = vmatpush.msra.mxu1 %v326_v5  ;;  %v323_v16 = vld [vmem:[#allocation2 + $0x50] sm:$0xff]  ;;  %479 = vmatpush.msra.mxu3 %v468_v13  ;;  %v416_v18 = vld [vmem:[#allocation2 + $0x160] sm:$0xff]  ;;  %v339_v20 = vld [vmem:[#allocation2 + $0xc8] sm:$0xff]  ;;  %s1125_s22 = scalar_lea.vmem %s1243_s0, %s786_s19  ;;  %s600_s17 = sshll.u32 %s292_s16, 4  ;;  %s1161_s17 = int_to_ptr.vmem [resolvable:$true] %s600_s17 }
  0x1f   : > { %360 = vmatpush.msra.mxu0 %v342_v6  ;;  %v466_v19 = vld [vmem:[#allocation2 + $0x1e0] sm:$0xff]  ;;  %v322_v21 = vld [vmem:[#allocation2 + $0x48] sm:$0xff]  ;;  %430 = vmatpush.msra.mxu2 %v417_v14  ;;  %v415_v22 = vld [vmem:[#allocation2 + $0x158] sm:$0xff]  ;;  %s602_s18 = sshll.u32 %s599_s13, 4  ;;  %s580_s19 = scalar_lea.sflag [#allocation4], %s1151_s23  ;;  %s603_s18 = int_to_ptr.hbm [resolvable:$true] %s602_s18 }
  0x20   : > { %383 = vmatpush.msra.mxu1 %v325_v7  ;;  %480 = vmatpush.msra.mxu3 %v467_v17  ;;  %v465_v23 = vld [vmem:[#allocation2 + $0x1d8] sm:$0xff]  ;;  %v338_v24 = vld [vmem:[#allocation2 + $0xc0] sm:$0xff]  ;;  %v414_v26 = vld [vmem:[#allocation2 + $0x150] sm:$0xff]  ;;  %s896_s20 = sshra.s32 %s603_s18, 4  ;;  %s902_s30 = scalar_lea.hbm %s1248_s5, 32  ;;  %s897_s20 = int_to_ptr.hbm [resolvable:$true] %s896_s20 }
  0x21   : > { %361 = vmatpush.msra.mxu0 %v341_v11  ;;  %v321_v25 = vld [vmem:[#allocation2 + $0x40] sm:$0xff]  ;;  %431 = vmatpush.msra.mxu2 %v416_v18  ;;  %v464_v27 = vld [vmem:[#allocation2 + $0x1d0] sm:$0xff]  ;;  %v337_v28 = vld [vmem:[#allocation2 + $0xb8] sm:$0xff]  ;;  %s898_s21 = scalar_lea.hbm %s897_s20, 16  ;;  %p903_p3 = scmp.lt.s32.totalorder %s897_s20, %s1248_s5 }
  0x22   : > { %384 = vmatpush.msra.mxu1 %v324_v12  ;;  %481 = vmatpush.msra.mxu3 %v466_v19  ;;  %v320_v29 = vld [vmem:[#allocation2 + $0x38] sm:$0xff]  ;;  %v413_v30 = vld [vmem:[#allocation2 + $0x148] sm:$0xff]  ;;  %v336_v32 = vld [vmem:[#allocation2 + $0xb0] sm:$0xff]  ;;  %p899_p0 = scmp.ne.s32.totalorder %s897_s20, %s898_s21  ;;  %p904_p4 = scmp.lt.s32.totalorder %s902_s30, %s898_s21 }
  0x23   : > { %362 = vmatpush.msra.mxu0 %v340_v15  ;;  %432 = vmatpush.msra.mxu2 %v415_v22  ;;  %v463_v31 = vld [vmem:[#allocation2 + $0x1c8] sm:$0xff]  ;;  %v319_v33 = vld [vmem:[#allocation2 + $0x30] sm:$0xff]  ;;  %v412_v34 = vld [vmem:[#allocation2 + $0x140] sm:$0xff] }
  0x24   : > { %385 = vmatpush.msra.mxu1 %v323_v16  ;;  %482 = vmatpush.msra.mxu3 %v465_v23  ;;  %v462_v35 = vld [vmem:[#allocation2 + $0x1c0] sm:$0xff]  ;;  %v335_v36 = vld [vmem:[#allocation2 + $0xa8] sm:$0xff]  ;;  %v411_v38 = vld [vmem:[#allocation2 + $0x138] sm:$0xff]  ;;  %p900_p1 = pnand %p899_p0, %p1095_p5  ;;  %p905_p7 = por %p904_p4, %p903_p3 }
  0x25   : > { %363 = vmatpush.msra.mxu0 %v339_v20  ;;  %433 = vmatpush.msra.mxu2 %v414_v26  ;;  %v318_v37 = vld [vmem:[#allocation2 + $0x28] sm:$0xff]  ;;  %v461_v39 = vld [vmem:[#allocation2 + $0x1b8] sm:$0xff]  ;;  %v334_v40 = vld [vmem:[#allocation2 + $0xa0] sm:$0xff] }
  0x26   : > { %386 = vmatpush.msra.mxu1 %v322_v21  ;;  %483 = vmatpush.msra.mxu3 %v464_v27  ;;  %v317_v41 = vld [vmem:[#allocation2 + $0x20] sm:$0xff]  ;;  %v410_v42 = vld [vmem:[#allocation2 + $0x130] sm:$0xff]  ;;  %v333_v44 = vld [vmem:[#allocation2 + $0x98] sm:$0xff]  ;;  %p901_p2 = pneg %p900_p1 }
  0x27   : > { %364 = vmatpush.msra.mxu0 %v338_v24  ;;  %434 = vmatpush.msra.mxu2 %v413_v30  ;;  %v460_v43 = vld [vmem:[#allocation2 + $0x1b0] sm:$0xff]  ;;  %v316_v45 = vld [vmem:[#allocation2 + $0x18] sm:$0xff]  ;;  %v409_v46 = vld [vmem:[#allocation2 + $0x128] sm:$0xff] }
  0x28   : > { %387 = vmatpush.msra.mxu1 %v321_v25  ;;  %484 = vmatpush.msra.mxu3 %v463_v31  ;;  %v459_v47 = vld [vmem:[#allocation2 + $0x1a8] sm:$0xff]  ;;  %v332_v48 = vld [vmem:[#allocation2 + $0x90] sm:$0xff]  ;;  %v408_v50 = vld [vmem:[#allocation2 + $0x120] sm:$0xff]  ;;  %p906_p8 = pnand %p905_p7, %p901_p2 }
  0x29   : > { %365 = vmatpush.msra.mxu0 %v337_v28  ;;  %435 = vmatpush.msra.mxu2 %v412_v34  ;;  %v315_v49 = vld [vmem:[#allocation2 + $0x10] sm:$0xff]  ;;  %v458_v51 = vld [vmem:[#allocation2 + $0x1a0] sm:$0xff]  ;;  %v331_v52 = vld [vmem:[#allocation2 + $0x88] sm:$0xff] }
  0x2a   : > { %388 = vmatpush.msra.mxu1 %v320_v29  ;;  %485 = vmatpush.msra.mxu3 %v462_v35  ;;  %v314_v53 = vld [vmem:[#allocation2 + $0x8] sm:$0xff]  ;;  %v407_v54 = vld [vmem:[#allocation2 + $0x118] sm:$0xff]  ;;  %v330_v56 = vld [vmem:[#allocation2 + $0x80] sm:$0xff] }
  0x2b   : > { %366 = vmatpush.msra.mxu0 %v336_v32  ;;  %436 = vmatpush.msra.mxu2 %v411_v38  ;;  %v457_v55 = vld [vmem:[#allocation2 + $0x198] sm:$0xff]  ;;  %v313_v57 = vld [vmem:[#allocation2] sm:$0xff]  ;;  %v1131_v60 = vld [vmem:[%s1125_s22 + $0x8] sm:$0xff] }
  0x2c   : > { %389 = vmatpush.msra.mxu1 %v319_v33  ;;  %486 = vmatpush.msra.mxu3 %v461_v39  ;;  %v519_v58 = vld [vmem:[#allocation2 + $0x278] sm:$0xff]  ;;  %v1128_v59 = vld [vmem:[%s1125_s22] sm:$0xff]  ;;  %v406_v61 = vld [vmem:[#allocation2 + $0x110] sm:$0xff]  ;;  %v422_v3 = vrot.slane %v1131_v60, 2  ;;  %v472_v5 = vrot.slane %v1131_v60, 3  ;;  %v351_v10 = vrot.slane %v1131_v60, 1 }
  0x2d   : > { %367 = vmatpush.msra.mxu0 %v335_v36  ;;  %437 = vmatpush.msra.mxu2 %v410_v42  ;;  %v456_v62 = vld [vmem:[#allocation2 + $0x190] sm:$0xff]  ;;  %v405_v0 = vld [vmem:[#allocation2 + $0x108] sm:$0xff]  ;;  %v421_v2 = vrot.slane %v1128_v59, 2  ;;  %v471_v4 = vrot.slane %v1128_v59, 3  ;;  %v404_v7 = vld [vmem:[#allocation2 + $0x100] sm:$0xff]  ;;  %v350_v9 = vrot.slane %v1128_v59, 1 }
  0x2e   : > { %390 = vmatpush.msra.mxu1 %v318_v37  ;;  %487 = vmatpush.msra.mxu3 %v460_v43  ;;  %v518_v63 = vld [vmem:[#allocation2 + $0x270] sm:$0xff]  ;;  %v455_v1 = vld [vmem:[#allocation2 + $0x188] sm:$0xff]  ;;  %v454_v8 = vld [vmem:[#allocation2 + $0x180] sm:$0xff]  ;;  %v521_v32 = vrot.slane %v1128_v59, 4  ;;  %v522_v33 = vrot.slane %v1131_v60, 4 }
  0x2f   : > { %368 = vmatpush.msra.mxu0 %v334_v40  ;;  %438 = vmatpush.msra.mxu2 %v409_v46  ;;  %v517_v6 = vld [vmem:[#allocation2 + $0x268] sm:$0xff]  ;;  %v516_v11 = vld [vmem:[#allocation2 + $0x260] sm:$0xff]  ;;  %v423_v12 = vsel %vm420_vm0, %v421_v2, %v422_v3  ;;  %v473_v13 = vsel %vm470_vm1, %v471_v4, %v472_v5  ;;  %v515_v14 = vld [vmem:[#allocation2 + $0x258] sm:$0xff]  ;;  %v352_v16 = vsel %vm349_vm2, %v350_v9, %v351_v10 }
  0x30   : > { %391 = vmatpush.msra.mxu1 %v317_v41  ;;  %488 = vmatpush.msra.mxu3 %v459_v47  ;;  %v312_v15 = vld [vmem:[%s1125_s22 + $0x10] sm:$0xf]  ;;  %v513_v20 = vld [vmem:[#allocation2 + $0x248] sm:$0xff]  ;;  %v512_v22 = vld [vmem:[#allocation2 + $0x240] sm:$0xff]  ;;  %v523_v37 = vsel %vm520_vm3, %v521_v32, %v522_v33 }
  0x31   : > { %369 = vmatpush.msra.mxu0 %v333_v44  ;;  %439 = vmatpush.msra.mxu2 %v408_v50  ;;  %v514_v17 = vld [vmem:[#allocation2 + $0x250] sm:$0xff]  ;;  %v424_v18 = vrot.slane %v312_v15, 2  ;;  %v474_v19 = vrot.slane %v312_v15, 3  ;;  %v353_v21 = vrot.slane %v312_v15, 1  ;;  %v511_v25 = vld [vmem:[#allocation2 + $0x238] sm:$0xff]  ;;  %v509_v28 = vld [vmem:[#allocation2 + $0x228] sm:$0xff] }
  0x32   : > { %392 = vmatpush.msra.mxu1 %v316_v45  ;;  %489 = vmatpush.msra.mxu3 %v458_v51  ;;  %v510_v27 = vld [vmem:[#allocation2 + $0x230] sm:$0xff]  ;;  %v508_v29 = vld [vmem:[#allocation2 + $0x220] sm:$0xff]  ;;  %v507_v30 = vld [vmem:[#allocation2 + $0x218] sm:$0xff]  ;;  %v524_v34 = vrot.slane %v312_v15, 4 }
  0x33   : > { %370 = vmatpush.msra.mxu0 %v332_v48  ;;  %440 = vmatpush.msra.mxu2 %v407_v54  ;;  %v425_v23 = vsel %vm420_vm0, %v422_v3, %v424_v18  ;;  %v475_v24 = vsel %vm470_vm1, %v472_v5, %v474_v19  ;;  %v354_v26 = vsel %vm349_vm2, %v351_v10, %v353_v21  ;;  %v506_v31 = vld [vmem:[#allocation2 + $0x210] sm:$0xff]  ;;  %v505_v35 = vld [vmem:[#allocation2 + $0x208] sm:$0xff]  ;;  %v504_v36 = vld [vmem:[#allocation2 + $0x200] sm:$0xff] }
  0x34   : > { %393 = vmatpush.msra.mxu1 %v315_v49  ;;  %490 = vmatpush.msra.mxu3 %v457_v55  ;;  %v525_v38 = vsel %vm520_vm3, %v522_v33, %v524_v34 }
  0x35   : > { %371 = vmatpush.msra.mxu0 %v331_v52  ;;  %441 = vmatpush.msra.mxu2 %v406_v61 }
  0x36   : > { %394 = vmatpush.msra.mxu1 %v314_v53  ;;  %491 = vmatpush.msra.mxu3 %v456_v62  ;;  %v851_v53 = vld [vmem:[%s1247_s4] ss:$0 sm:$0xff] }
  0x37   : > { %372 = vmatpush.msra.mxu0 %v330_v56  ;;  %442 = vmatpush.msra.mxu2 %v405_v0 }
  0x38   : > { %395 = vmatpush.msra.mxu1 %v313_v57  ;;  %492 = vmatpush.msra.mxu3 %v455_v1 }
  0x39   : > { %528 = vmatpush.msrb.mxu0 %v519_v58  ;;  %443 = vmatpush.msra.mxu2 %v404_v7 }
  0x3a   : > { %770 = vmatpush.msrb.mxu1 %v519_v58  ;;  %493 = vmatpush.msra.mxu3 %v454_v8 }
  0x3b   : > { %529 = vmatpush.msrb.mxu0 %v518_v63  ;;  %444 = vmatmul.f32.vlgmr.msra.gmra.mxu2 %v423_v12 }
  0x3c   : > { %771 = vmatpush.msrb.mxu1 %v518_v63  ;;  %494 = vmatmul.f32.vlgmr.msra.gmra.mxu3 %v473_v13 }
  0x3d   : > { %530 = vmatpush.msrb.mxu0 %v517_v6  ;;  %396 = vmatmul.f32.vlgmr.msra.gmra.mxu1 %v1128_v59 }
  0x3e   : > { %772 = vmatpush.msrb.mxu1 %v517_v6  ;;  %373 = vmatmul.f32.vlgmr.msra.gmra.mxu0 %v352_v16 }
  0x3f   : > { %531 = vmatpush.msrb.mxu0 %v516_v11 }
  0x40   : > { %773 = vmatpush.msrb.mxu1 %v516_v11 }
  0x41   : > { %532 = vmatpush.msrb.mxu0 %v515_v14 }
  0x42   : > { %774 = vmatpush.msrb.mxu1 %v515_v14 }
  0x43   : > { %533 = vmatpush.msrb.mxu0 %v514_v17  ;;  %447 = vmatmul.f32.gmra.mxu2 %v425_v23 }
  0x44   : > { %775 = vmatpush.msrb.mxu1 %v514_v17  ;;  %497 = vmatmul.f32.gmra.mxu3 %v475_v24 }
  0x45   : > { %534 = vmatpush.msrb.mxu0 %v513_v20  ;;  %399 = vmatmul.f32.gmra.mxu1 %v1131_v60 }
  0x46   : > { %776 = vmatpush.msrb.mxu1 %v513_v20  ;;  %376 = vmatmul.f32.gmra.mxu0 %v354_v26 }
  0x47   : > { %535 = vmatpush.msrb.mxu0 %v512_v22 }
  0x48   : > { %777 = vmatpush.msrb.mxu1 %v512_v22 }
  0x49   : > { %536 = vmatpush.msrb.mxu0 %v511_v25 }
  0x4a   : > { %778 = vmatpush.msrb.mxu1 %v511_v25 }
  0x4b   : > { %537 = vmatpush.msrb.mxu0 %v510_v27 }
  0x4c   : > { %779 = vmatpush.msrb.mxu1 %v510_v27 }
  0x4d   : > { %538 = vmatpush.msrb.mxu0 %v509_v28 }
  0x4e   : > { %780 = vmatpush.msrb.mxu1 %v509_v28 }
  0x4f   : > { %539 = vmatpush.msrb.mxu0 %v508_v29 }
  0x50   : > { %781 = vmatpush.msrb.mxu1 %v508_v29 }
  0x51   : > { %540 = vmatpush.msrb.mxu0 %v507_v30 }
  0x52   : > { %782 = vmatpush.msrb.mxu1 %v507_v30 }
  0x53   : > { %541 = vmatpush.msrb.mxu0 %v506_v31 }
  0x54   : > { %783 = vmatpush.msrb.mxu1 %v506_v31 }
  0x55   : > { %542 = vmatpush.msrb.mxu0 %v505_v35 }
  0x56   : > { %784 = vmatpush.msrb.mxu1 %v505_v35 }
  0x57   : > { %543 = vmatpush.msrb.mxu0 %v504_v36 }
  0x58   : > { %785 = vmatpush.msrb.mxu1 %v504_v36  ;;  %544 = vmatmul.f32.vlgmr.msrb.gmra.mxu0 %v523_v37 }
  0x59   : > { %547 = vmatmul.f32.vlgmr.msrb.gmra.mxu1 %v525_v38 }
  0xba   : > { %v397_v40 = vpop.f32.mrf.mxu1 }
  0xbb   : > { %v374_v39 = vpop.f32.mrf.mxu0 }
  0xbc   : > { %v398_v45 = vadd.f32 %v397_v40, %v374_v39 }
  0xbe   : > { %v445_v41 = vpop.f32.mrf.mxu2 }
  0xbf   : > { %v495_v42 = vpop.f32.mrf.mxu3  ;;  %v451_v48 = vadd.f32 %v445_v41, %v398_v45 }
  0xc1   : > { %v501_v51 = vadd.f32 %v495_v42, %v451_v48 }
  0xc2   : > { %v400_v44 = vpop.f32.mrf.mxu1 }
  0xc3   : > { %v377_v43 = vpop.f32.mrf.mxu0 }
  0xc4   : > { %v401_v46 = vadd.f32 %v400_v44, %v377_v43 }
  0xc6   : > { %v448_v47 = vpop.f32.mrf.mxu2 }
  0xc7   : > { %v452_v49 = vadd.f32 %v448_v47, %v401_v46  ;;  %v498_v50 = vpop.f32.mrf.mxu3 }
  0xc9   : > { %v502_v52 = vadd.f32 %v498_v50, %v452_v49 }
  0xd5   : > { %v545_v54 = vpop.f32.mrf.mxu0 }
  0xd6   : > { %v548_v55 = vpop.f32.mrf.mxu1  ;;  %v551_v56 = vadd.f32 %v545_v54, %v501_v51 }
  0xd7   : > { %v552_v57 = vadd.f32 %v548_v55, %v502_v52 }
  0xd8   : > { %v557_v58 = vadd.f32 %v851_v53, %v551_v56 }
  0xd9   : > { %v558_v59 = vadd.f32 %v851_v53, %v552_v57 }
  0xda   : > { %559 = vst [vmem:[%s292_s16] sm:$0xff] %v557_v58  ;;  %v569_v60 = vmul.f32 %v557_v58, %v557_v58 }
  0xdb   : > { %v561_v61 = vadd.f32 %v558_v59, %v557_v58  ;;  %v570_v62 = vmul.f32 %v558_v59, %v558_v59  ;;  %560 = vst [vmem:[%s292_s16 + $0x8] sm:$0xff] %v558_v59 }
  0xdd   : > { %v562_v63 = vrot.slane %v561_v61, 4  ;;  %v571_v0 = vadd.f32 %v570_v62, %v569_v60 }
  0xde   : > { %909 = shalt.err (!%p906_p8)
}
  0xdf   : > { %s1013_s13 = smov 128   ;;  %s1014_s14 = smov 8   ;;  %v563_v1 = vadd.f32 %v562_v63, %v561_v61  ;;  %v572_v2 = vrot.slane %v571_v0, 4 }
  0xe0   : > { %791 = dma.vmem_to_hbm [thread:$0]  (%p1095_p5), %s1161_s17, 256, %s603_s18, %s580_s19, %s1013_s13, %s1013_s13, %s1014_s14  }
  0xe1   : > { %v564_v3 = vrot.slane %v563_v1, 2  ;;  %v573_v4 = vadd.f32 %v572_v2, %v571_v0  ;;  %s614_s20 = scalar_lea.hbm %s1249_s6, %s1076_s26  ;;  %s584_s21 = sand.u32 1, %s1076_s26  }
  0xe2   : > { %s627_s30 = scalar_lea.hbm %s1250_s7, %s1076_s26  ;;  %s298_s11 = scalar_lea.vmem [#allocation6], %s1151_s23 }
  0xe3   : > { %v565_v5 = vadd.f32 %v564_v3, %v563_v1  ;;  %v574_v6 = vrot.slane %v573_v4, 2  ;;  %s1185_s12 = sshll.u32 %s298_s11, 4  ;;  %s1187_s17 = sshll.u32 %s614_s20, 4  ;;  %s617_s12 = int_to_ptr.vmem [resolvable:$true] %s1185_s12  ;;  %s619_s17 = int_to_ptr.hbm [resolvable:$true] %s1187_s17 }
  0xe4   : > { %s304_s18 = scalar_lea.vmem [#allocation8], %s1151_s23  ;;  %s1192_s13 = sshll.u32 %s627_s30, 4  ;;  %s632_s13 = int_to_ptr.hbm [resolvable:$true] %s1192_s13 }
  0xe5   : > { %v575_v7 = vadd.f32 %v574_v6, %v573_v4  ;;  %v566_v8 = vrot.slane %v565_v5, 1  ;;  %s1190_s19 = sshll.u32 %s304_s18, 4  ;;  %s585_s26 = scalar_lea.sflag [#allocation7], %s584_s21  ;;  %s630_s19 = int_to_ptr.vmem [resolvable:$true] %s1190_s19 }
  0xe6   : > { %s924_s14 = sshra.s32 %s619_s17, 4  ;;  %s930_s20 = scalar_lea.hbm %s1249_s6, 2  ;;  %s925_s14 = int_to_ptr.hbm [resolvable:$true] %s924_s14 }
  0xe7   : > { %v567_v9 = vadd.f32 %v566_v8, %v565_v5  ;;  %v576_v10 = vrot.slane %v575_v7, 1  ;;  %s926_s15 = scalar_lea.hbm %s925_s14, 1  ;;  %p931_p12 = scmp.lt.s32.totalorder %s925_s14, %s1249_s6 }
  0xe8   : > { %p927_p9 = scmp.ne.s32.totalorder %s925_s14, %s926_s15  ;;  %p932_p13 = scmp.lt.s32.totalorder %s930_s20, %s926_s15 }
  0xe9   : > { %568 = vst [vmem:[%s298_s11] sm:$0x1] %v567_v9  ;;  %v577_v11 = vadd.f32 %v576_v10, %v575_v7 }
  0xea   : > { %p928_p10 = pnand %p927_p9, %p1095_p5  ;;  %p933_p0 = por %p932_p13, %p931_p12 }
  0xec   : > { %p929_p11 = pneg %p928_p10 }
  0xee   : > { %p934_p1 = pnand %p933_p0, %p929_p11 }
  0xf0   : > { %937 = shalt.err (!%p934_p1)
}
  0xf1   : > { %792 = dma.vmem_to_hbm [thread:$0]  (%p1095_p5), %s617_s12, 16, %s619_s17, %s585_s26   ;;  %578 = vst [vmem:[%s304_s18] sm:$0x1] %v577_v11 }
  0xf2   : > { %s952_s21 = sshra.s32 %s632_s13, 4  ;;  %s958_s15 = scalar_lea.hbm %s1250_s7, 2  ;;  %s953_s21 = int_to_ptr.hbm [resolvable:$true] %s952_s21 }
  0xf3   : > { %s954_s30 = scalar_lea.hbm %s953_s21, 1  ;;  %p959_p7 = scmp.lt.s32.totalorder %s953_s21, %s1250_s7 }
  0xf4   : > { %p955_p2 = scmp.ne.s32.totalorder %s953_s21, %s954_s30  ;;  %p960_p8 = scmp.lt.s32.totalorder %s958_s15, %s954_s30 }
  0xf6   : > { %p956_p3 = pnand %p955_p2, %p1095_p5  ;;  %p961_p9 = por %p960_p8, %p959_p7 }
  0xf8   : > { %p957_p4 = pneg %p956_p3 }
  0xfa   : > { %p962_p10 = pnand %p961_p9, %p957_p4 }
  0xfc   : > { %965 = shalt.err (!%p962_p10)
}
  0xfd   : > { %793 = dma.vmem_to_hbm [thread:$0]  (%p1095_p5), %s630_s19, 16, %s632_s13, %s585_s26  }
  0xfe PF: > { %p813_p11 = scmp.ge.s32.totalorder %s1008_s25, 2  ;;  %s643_s12 = sand.u32 1, %s996_s1  }
  0xff   : > { %s644_s17 = scalar_lea.sflag [#allocation4], %s643_s12 }
 0x100   : > { %p802_p12 = pnand %p813_p11, %p1099_p6 }
 0x102   : > { %p803_p13 = pneg %p802_p12 }
 0x104   : > { %987 = dma.done.wait (%p803_p13), %s644_s17, 256  }
 0x105   : > { %989 = vsyncadd (%p803_p13), %s644_s17, 4294967040  ;;  %s653_s9 = sand.u32 1, %s756_s27  }
 0x106   : > { %s654_s18 = scalar_lea.sflag [#allocation7], %s653_s9 }
 0x107   : > { %991 = dma.done.wait (%p803_p13), %s654_s18, 32  }
 0x108   : > { %993 = vsyncadd (%p803_p13), %s654_s18, 4294967264  ;;  %p22_p5 = scmp.ge.s32.totalorder %s1080_s28, 4   ;;  %s1253_s1 = smov %s1000_s2 }
 0x109   : > { %s1254_s2 = smov %s1004_s24  ;;  %s1255_s24 = smov %s1093_s8 }
 0x10a   : > { %s1256_s25 = smov %s1080_s28  ;;  %24 = sbr.rel (!%p22_p5) target bundleno = 6 (0x6), region = 116 }
 0x10f   :  { %668 = vsyncpa [#allocation3], 1 }
 0x110   :  { %670 = vsyncpa [#allocation3 + $0x1], 1 }
 0x111   :  { %671 = vsyncpa [#allocation4], 1 }
 0x112   :  { %673 = vsyncpa [#allocation4 + $0x1], 1 }
 0x113   :  { %674 = vsyncpa [#allocation7], 1 }
 0x114   :  { %676 = vsyncpa [#allocation7 + $0x1], 1 }

</bundles_post_ra>
